<compile_context>
chip_gen: v6e
topology: v6e:2x2x1
jax: 0.10.0
libtpu: 0.0.40
codegen_flags: <defaults>
</compile_context>

<pallas_src>
import jax
import jax.numpy as jnp
from jax.experimental import pallas as pl
from jax.experimental.pallas import tpu as pltpu

# ----------------------------- config (small) -------------------------------
B = 2              # batch
S = 8              # seq_len (pad_size)
H = 32             # hidden_size
F = 32             # num_filters
C = 4              # num_classes
VOCAB = 50
R = B * S          # all batch rows stacked along the sublane axis
OUT_LANES = 128    # lane-dense fc output width (sliced back to C outside)


# ------------------------------ Pallas kernel -------------------------------
def dpcnn_kernel(emb_ref, mask_ref, wenc_ref, benc_ref,
                 wr_ref, br_ref, wc_ref, bc_ref, wf_ref, bf_ref, out_ref):
    f32 = jnp.float32

    wenc = wenc_ref[...]                  # [H, H]
    wr_cat = wr_ref[...]                  # [3H, F] conv_region taps, contraction-packed
    wc_cat = wc_ref[...]                  # [3F, F] conv taps, contraction-packed
    wf = wf_ref[...]                      # [F, OUT_LANES]

    # Hoisted bias broadcasts (reused by every conv of the unrolled pyramid).
    benc_full = jnp.broadcast_to(benc_ref[...], (R, H))
    br_full = jnp.broadcast_to(br_ref[...], (R, F))
    bc_full = jnp.broadcast_to(bc_ref[...], (R, F))
    bf_full = jnp.broadcast_to(bf_ref[...], (R, OUT_LANES))

    row_in_blk = jax.lax.broadcasted_iota(jnp.int32, (R, F), 0) % S

    def mm(a, b):
        return jnp.dot(a, b, preferred_element_type=f32)

    def keep_rows(x, n):                  # zero rows >= n inside each batch block
        return jnp.where(row_in_blk < n, x, 0.0)

    def roll_up(x, k):                    # result[i] = x[(i + k) % R]   (shift rows up by k)
        return pltpu.roll(x, (R - k) % R, axis=0)

    def roll_dn1(x):                      # result[i] = x[(i - 1) % R]   (shift rows down by 1)
        return pltpu.roll(x, 1, axis=0)

    def conv3(parts, w_cat, b_full, n_out):
        # One fused MXU pass for all three taps: [R, 3*] @ [3*, F].
        slab = jnp.concatenate(parts, axis=-1)
        return keep_rows(mm(slab, w_cat) + b_full, n_out)

    def pad1_relu_conv(x, n_rows):
        # ZeroPad2d((0,0,1,1)) -> ReLU -> Conv2d(F, F, (3,1)).
        # Taps are [p[i], p[i+1], p[i+2]] of the zero-padded column, i.e.
        # [dn1(relu x), relu x, up1(relu x)]: the top pad row comes from the
        # previous block's (zero) last row via the roll, the bottom pad row is
        # already zero by the row invariant.
        rx = jnp.maximum(x, 0.0)
        return conv3([roll_dn1(rx), rx, roll_up(rx, 1)], wc_cat, bc_full, n_rows)

    # --- synthetic encoder tail: dense + tanh + attention mask ----------------
    enc = jnp.tanh(mm(emb_ref[...], wenc) + benc_full) * mask_ref[...]     # [R, H]

    # --- conv_region: Conv2d(1, F, (3, H)) as one fused [R,3H]x[3H,F] pass ----
    n = S - 2                              # valid rows per batch block
    out = conv3([enc, roll_up(enc, 1), roll_up(enc, 2)], wr_cat, br_full, n)
    out = pad1_relu_conv(out, n)
    out = pad1_relu_conv(out, n)

    # --- DPCNN pyramid (static shapes -> fully unrolled at trace time) --------
    while n > 2:
        m = n + 1                          # ZeroPad2d((0,0,0,1)): free (row n already zero)
        oh = (m - 3) // 2 + 1              # MaxPool2d((3,1), stride=2)
        t = jnp.maximum(jnp.maximum(out, roll_up(out, 1)), roll_up(out, 2))
        # Compaction: row j of each block <- row 2j of t (only rows < oh kept).
        px = jnp.where(row_in_blk == 0, t, 0.0)
        for j in range(1, oh):
            px = px + jnp.where(row_in_blk == j, roll_up(t, j), 0.0)
        x = pad1_relu_conv(px, oh)
        x = pad1_relu_conv(x, oh)
        out = x + px
        n = oh

    assert n == 1, "DPCNN pyramid must collapse to one row (matches torch .squeeze())"

    # --- fc on the whole buffer, lane-dense [R, 128] store ---------------------
    out_ref[...] = mm(out, wf) + bf_full


def dpcnn_forward(emb, mask, w_enc, b_enc, wr, br, wc, bc, wf, bf):
    # Batch stacked along sublanes; conv taps packed along the contraction dim
    # so each conv is a single wide matmul; fc weight/bias padded lane-dense.
    emb2d = emb.reshape(R, H)
    mask2d = mask.reshape(R, 1)
    wr_cat = wr.reshape(3 * H, F)
    wc_cat = wc.reshape(3 * F, F)
    wf_pad = jnp.zeros((F, OUT_LANES), jnp.float32).at[:, :C].set(wf)
    bf_pad = jnp.zeros((1, OUT_LANES), jnp.float32).at[:, :C].set(bf)

    out = pl.pallas_call(
        dpcnn_kernel,
        out_shape=jax.ShapeDtypeStruct((R, OUT_LANES), jnp.float32),
        # Single invocation, whole-array VMEM blocks (working set < 100 KB).
        # For large batches, add a leading row-tile grid axis with
        # dimension_semantics=("parallel",) to shard across v7x's two cores.
    )(emb2d, mask2d, w_enc, b_enc, wr_cat, br, wc_cat, bc, wf_pad, bf_pad)
    # Pick row 0 of each batch block and the real class columns (free slice).
    return out.reshape(B, S, OUT_LANES)[:, 0, :C]


# ------------------------ pure-JAX reference (check) ------------------------
def reference(emb, mask, w_enc, b_enc, wr, br, wc, bc, wf, bf):
    enc = jnp.tanh(emb @ w_enc + b_enc) * mask[..., None]            # [B, S, H]

    out = (jnp.einsum('bik,kf->bif', enc[:, 0:S - 2], wr[0])
           + jnp.einsum('bik,kf->bif', enc[:, 1:S - 1], wr[1])
           + jnp.einsum('bik,kf->bif', enc[:, 2:S], wr[2]) + br)

    relu = lambda x: jnp.maximum(x, 0.0)
    pad1 = lambda x: jnp.pad(x, ((0, 0), (1, 1), (0, 0)))
    pad2 = lambda x: jnp.pad(x, ((0, 0), (0, 1), (0, 0)))

    def conv3(x):
        h = x.shape[1]
        return (jnp.einsum('bic,co->bio', x[:, 0:h - 2], wc[0])
                + jnp.einsum('bic,co->bio', x[:, 1:h - 1], wc[1])
                + jnp.einsum('bic,co->bio', x[:, 2:h], wc[2]) + bc)

    def maxpool(x):
        h = x.shape[1]
        oh = (h - 3) // 2 + 1
        return jnp.stack([jnp.max(x[:, 2 * j:2 * j + 3], axis=1) for j in range(oh)], axis=1)

    out = conv3(relu(pad1(out)))
    out = conv3(relu(pad1(out)))
    while out.shape[1] > 2:
        px = maxpool(pad2(out))
        x = conv3(relu(pad1(px)))
        x = conv3(relu(pad1(x)))
        out = x + px
    return out[:, 0, :] @ wf + bf


# ----------------------------------- main ------------------------------------
if __name__ == "__main__":
    key = jax.random.PRNGKey(0)
    ks = jax.random.split(key, 10)

    # synthetic inputs: x = (context_token_ids, seq_len, attention_mask)
    context = jax.random.randint(ks[0], (B, S), 0, VOCAB)                  # int32 token ids
    mask = jnp.array([[1.0] * S, [1.0] * (S - 2) + [0.0] * 2], dtype=jnp.float32)

    # deterministic synthetic "BERT" embeddings (plain-JAX glue, see TODO above)
    emb_table = jax.random.normal(ks[1], (VOCAB, H), jnp.float32) * 0.1
    pos_emb = jax.random.normal(ks[2], (S, H), jnp.float32) * 0.1
    w_enc = jax.random.normal(ks[3], (H, H), jnp.float32) * 0.1
    b_enc = jnp.zeros((1, H), jnp.float32)
    emb = jnp.take(emb_table, context, axis=0) + pos_emb[None]             # [B, S, H]

    # DPCNN parameters (deterministic init; tap layout [3, in, out])
    w_region = jax.random.normal(ks[4], (3, H, F), jnp.float32) * 0.05     # Conv2d(1,F,(3,H)) taps
    b_region = jax.random.normal(ks[5], (1, F), jnp.float32) * 0.05
    w_conv = jax.random.normal(ks[6], (3, F, F), jnp.float32) * 0.05       # Conv2d(F,F,(3,1)) taps
    b_conv = jax.random.normal(ks[7], (1, F), jnp.float32) * 0.05
    w_fc = jax.random.normal(ks[8], (F, C), jnp.float32) * 0.05            # Linear(F,C)
    b_fc = jax.random.normal(ks[9], (1, C), jnp.float32) * 0.05

    out = dpcnn_forward(emb, mask, w_enc, b_enc, w_region, b_region,
                        w_conv, b_conv, w_fc, b_fc)
    out = jax.block_until_ready(out)

    ref = reference(emb, mask, w_enc, b_enc, w_region, b_region,
                    w_conv, b_conv, w_fc, b_fc)
    assert out.shape == (B, C)
    # Tolerance covers default-precision MXU rounding differences between the
    # fused 96-deep contraction in the kernel and the 3-tap einsums of the
    # reference; structural errors would be orders of magnitude larger.
    assert jnp.allclose(out, ref, atol=1e-3, rtol=1e-2), (out, ref)

    print("KERNEL_OK")
</pallas_src>

<mosaic_0001>
module attributes {stable_mosaic.version = 11 : i64} {
  func.func @dpcnn_kernel(%arg0: memref<16x32xf32, #tpu.memory_space<vmem>>, %arg1: memref<16x1xf32, #tpu.memory_space<vmem>>, %arg2: memref<32x32xf32, #tpu.memory_space<vmem>>, %arg3: memref<1x32xf32, #tpu.memory_space<vmem>>, %arg4: memref<96x32xf32, #tpu.memory_space<vmem>>, %arg5: memref<1x32xf32, #tpu.memory_space<vmem>>, %arg6: memref<96x32xf32, #tpu.memory_space<vmem>>, %arg7: memref<1x32xf32, #tpu.memory_space<vmem>>, %arg8: memref<32x128xf32, #tpu.memory_space<vmem>>, %arg9: memref<1x128xf32, #tpu.memory_space<vmem>>, %arg10: memref<16x128xf32, #tpu.memory_space<vmem>>) attributes {dimension_semantics = [], scalar_prefetch = 0 : i64, scratch_operands = 0 : i64, tpu.core_type = #tpu.core_type<tc>} {
    %c0 = arith.constant 0 : index
    %c0_0 = arith.constant 0 : index
    %0 = vector.load %arg2[%c0, %c0_0] : memref<32x32xf32, #tpu.memory_space<vmem>>, vector<32x32xf32>
    %c0_1 = arith.constant 0 : index
    %c0_2 = arith.constant 0 : index
    %1 = vector.load %arg4[%c0_1, %c0_2] : memref<96x32xf32, #tpu.memory_space<vmem>>, vector<96x32xf32>
    %c0_3 = arith.constant 0 : index
    %c0_4 = arith.constant 0 : index
    %2 = vector.load %arg6[%c0_3, %c0_4] : memref<96x32xf32, #tpu.memory_space<vmem>>, vector<96x32xf32>
    %c0_5 = arith.constant 0 : index
    %c0_6 = arith.constant 0 : index
    %3 = vector.load %arg8[%c0_5, %c0_6] : memref<32x128xf32, #tpu.memory_space<vmem>>, vector<32x128xf32>
    %c0_7 = arith.constant 0 : index
    %c0_8 = arith.constant 0 : index
    %4 = vector.load %arg3[%c0_7, %c0_8] : memref<1x32xf32, #tpu.memory_space<vmem>>, vector<1x32xf32>
    %5 = vector.shape_cast %4 : vector<1x32xf32> to vector<1x32xf32>
    %6 = vector.broadcast %5 : vector<1x32xf32> to vector<16x32xf32>
    %c0_9 = arith.constant 0 : index
    %c0_10 = arith.constant 0 : index
    %7 = vector.load %arg5[%c0_9, %c0_10] : memref<1x32xf32, #tpu.memory_space<vmem>>, vector<1x32xf32>
    %8 = vector.shape_cast %7 : vector<1x32xf32> to vector<1x32xf32>
    %9 = vector.broadcast %8 : vector<1x32xf32> to vector<16x32xf32>
    %c0_11 = arith.constant 0 : index
    %c0_12 = arith.constant 0 : index
    %10 = vector.load %arg7[%c0_11, %c0_12] : memref<1x32xf32, #tpu.memory_space<vmem>>, vector<1x32xf32>
    %11 = vector.shape_cast %10 : vector<1x32xf32> to vector<1x32xf32>
    %12 = vector.broadcast %11 : vector<1x32xf32> to vector<16x32xf32>
    %c0_13 = arith.constant 0 : index
    %c0_14 = arith.constant 0 : index
    %13 = vector.load %arg9[%c0_13, %c0_14] : memref<1x128xf32, #tpu.memory_space<vmem>>, vector<1x128xf32>
    %14 = vector.shape_cast %13 : vector<1x128xf32> to vector<1x128xf32>
    %15 = vector.broadcast %14 : vector<1x128xf32> to vector<16x128xf32>
    %16 = tpu.iota {dimensions = array<i32: 0>} : vector<16x32xi32>
    %c8_i32 = arith.constant 8 : i32
    %c0_i32 = arith.constant 0 : i32
    %17 = arith.cmpi eq, %c8_i32, %c0_i32 : i32
    %c1_i32 = arith.constant 1 : i32
    %18 = arith.select %17, %c1_i32, %c8_i32 : i32
    %19 = vector.broadcast %18 : i32 to vector<16x32xi32>
    %20 = arith.remsi %16, %19 : vector<16x32xi32>
    %c0_i32_15 = arith.constant 0 : i32
    %21 = vector.broadcast %c0_i32_15 : i32 to vector<16x32xi32>
    %22 = arith.cmpi ne, %20, %21 : vector<16x32xi32>
    %c0_i32_16 = arith.constant 0 : i32
    %23 = vector.broadcast %c0_i32_16 : i32 to vector<16x32xi32>
    %24 = arith.cmpi slt, %20, %23 : vector<16x32xi32>
    %c0_i32_17 = arith.constant 0 : i32
    %25 = arith.cmpi slt, %18, %c0_i32_17 : i32
    %26 = vector.broadcast %25 : i1 to vector<16x32xi1>
    %27 = vector.broadcast %26 : vector<16x32xi1> to vector<16x32xi1>
    %28 = arith.xori %24, %27 : vector<16x32xi1>
    %29 = arith.andi %28, %22 : vector<16x32xi1>
    %30 = vector.broadcast %18 : i32 to vector<16x32xi32>
    %31 = arith.addi %20, %30 : vector<16x32xi32>
    %32 = arith.select %29, %31, %20 : vector<16x32xi1>, vector<16x32xi32>
    %c0_18 = arith.constant 0 : index
    %c0_19 = arith.constant 0 : index
    %33 = vector.load %arg0[%c0_18, %c0_19] : memref<16x32xf32, #tpu.memory_space<vmem>>, vector<16x32xf32>
    %cst = arith.constant dense<0.000000e+00> : vector<16x32xf32>
    %34 = tpu.matmul %33, %0, %cst {dimension_numbers = #tpu.dot_dimension_numbers<[1], [0], [0], [1], [0, 0, 1, 1], [], []>} : vector<16x32xf32>, vector<32x32xf32>, vector<16x32xf32> -> vector<16x32xf32>
    %35 = arith.addf %34, %6 : vector<16x32xf32>
    %36 = math.tanh %35 : vector<16x32xf32>
    %c0_20 = arith.constant 0 : index
    %c0_21 = arith.constant 0 : index
    %37 = vector.load %arg1[%c0_20, %c0_21] : memref<16x1xf32, #tpu.memory_space<vmem>>, vector<16x1xf32>
    %38 = vector.broadcast %37 : vector<16x1xf32> to vector<16x32xf32>
    %39 = arith.mulf %36, %38 : vector<16x32xf32>
    %c15_i32 = arith.constant 15 : i32
    %40 = tpu.dynamic_rotate %39 by %c15_i32 dim 0 : vector<16x32xf32>, i32 -> vector<16x32xf32>
    %c14_i32 = arith.constant 14 : i32
    %41 = tpu.dynamic_rotate %39 by %c14_i32 dim 0 : vector<16x32xf32>, i32 -> vector<16x32xf32>
    %42 = tpu.concatenate %39, %40, %41 in 1 : vector<16x32xf32>, vector<16x32xf32>, vector<16x32xf32> -> vector<16x96xf32>
    %cst_22 = arith.constant dense<0.000000e+00> : vector<16x32xf32>
    %43 = tpu.matmul %42, %1, %cst_22 {dimension_numbers = #tpu.dot_dimension_numbers<[1], [0], [0], [1], [0, 0, 1, 1], [], []>} : vector<16x96xf32>, vector<96x32xf32>, vector<16x32xf32> -> vector<16x32xf32>
    %44 = arith.addf %43, %9 : vector<16x32xf32>
    %c6_i32 = arith.constant 6 : i32
    %45 = vector.broadcast %c6_i32 : i32 to vector<16x32xi32>
    %46 = arith.cmpi slt, %32, %45 : vector<16x32xi32>
    %cst_23 = arith.constant 0.000000e+00 : f32
    %47 = vector.broadcast %cst_23 : f32 to vector<16x32xf32>
    %48 = arith.select %46, %44, %47 : vector<16x32xi1>, vector<16x32xf32>
    %cst_24 = arith.constant 0.000000e+00 : f32
    %49 = vector.broadcast %cst_24 : f32 to vector<16x32xf32>
    %50 = arith.maximumf %48, %49 : vector<16x32xf32>
    %c1_i32_25 = arith.constant 1 : i32
    %51 = tpu.dynamic_rotate %50 by %c1_i32_25 dim 0 : vector<16x32xf32>, i32 -> vector<16x32xf32>
    %c15_i32_26 = arith.constant 15 : i32
    %52 = tpu.dynamic_rotate %50 by %c15_i32_26 dim 0 : vector<16x32xf32>, i32 -> vector<16x32xf32>
    %53 = tpu.concatenate %51, %50, %52 in 1 : vector<16x32xf32>, vector<16x32xf32>, vector<16x32xf32> -> vector<16x96xf32>
    %cst_27 = arith.constant dense<0.000000e+00> : vector<16x32xf32>
    %54 = tpu.matmul %53, %2, %cst_27 {dimension_numbers = #tpu.dot_dimension_numbers<[1], [0], [0], [1], [0, 0, 1, 1], [], []>} : vector<16x96xf32>, vector<96x32xf32>, vector<16x32xf32> -> vector<16x32xf32>
    %55 = arith.addf %54, %12 : vector<16x32xf32>
    %c6_i32_28 = arith.constant 6 : i32
    %56 = vector.broadcast %c6_i32_28 : i32 to vector<16x32xi32>
    %57 = arith.cmpi slt, %32, %56 : vector<16x32xi32>
    %cst_29 = arith.constant 0.000000e+00 : f32
    %58 = vector.broadcast %cst_29 : f32 to vector<16x32xf32>
    %59 = arith.select %57, %55, %58 : vector<16x32xi1>, vector<16x32xf32>
    %cst_30 = arith.constant 0.000000e+00 : f32
    %60 = vector.broadcast %cst_30 : f32 to vector<16x32xf32>
    %61 = arith.maximumf %59, %60 : vector<16x32xf32>
    %c1_i32_31 = arith.constant 1 : i32
    %62 = tpu.dynamic_rotate %61 by %c1_i32_31 dim 0 : vector<16x32xf32>, i32 -> vector<16x32xf32>
    %c15_i32_32 = arith.constant 15 : i32
    %63 = tpu.dynamic_rotate %61 by %c15_i32_32 dim 0 : vector<16x32xf32>, i32 -> vector<16x32xf32>
    %64 = tpu.concatenate %62, %61, %63 in 1 : vector<16x32xf32>, vector<16x32xf32>, vector<16x32xf32> -> vector<16x96xf32>
    %cst_33 = arith.constant dense<0.000000e+00> : vector<16x32xf32>
    %65 = tpu.matmul %64, %2, %cst_33 {dimension_numbers = #tpu.dot_dimension_numbers<[1], [0], [0], [1], [0, 0, 1, 1], [], []>} : vector<16x96xf32>, vector<96x32xf32>, vector<16x32xf32> -> vector<16x32xf32>
    %66 = arith.addf %65, %12 : vector<16x32xf32>
    %c6_i32_34 = arith.constant 6 : i32
    %67 = vector.broadcast %c6_i32_34 : i32 to vector<16x32xi32>
    %68 = arith.cmpi slt, %32, %67 : vector<16x32xi32>
    %cst_35 = arith.constant 0.000000e+00 : f32
    %69 = vector.broadcast %cst_35 : f32 to vector<16x32xf32>
    %70 = arith.select %68, %66, %69 : vector<16x32xi1>, vector<16x32xf32>
    %c15_i32_36 = arith.constant 15 : i32
    %71 = tpu.dynamic_rotate %70 by %c15_i32_36 dim 0 : vector<16x32xf32>, i32 -> vector<16x32xf32>
    %72 = arith.maximumf %70, %71 : vector<16x32xf32>
    %c14_i32_37 = arith.constant 14 : i32
    %73 = tpu.dynamic_rotate %70 by %c14_i32_37 dim 0 : vector<16x32xf32>, i32 -> vector<16x32xf32>
    %74 = arith.maximumf %72, %73 : vector<16x32xf32>
    %c0_i32_38 = arith.constant 0 : i32
    %75 = vector.broadcast %c0_i32_38 : i32 to vector<16x32xi32>
    %76 = arith.cmpi eq, %32, %75 : vector<16x32xi32>
    %cst_39 = arith.constant 0.000000e+00 : f32
    %77 = vector.broadcast %cst_39 : f32 to vector<16x32xf32>
    %78 = arith.select %76, %74, %77 : vector<16x32xi1>, vector<16x32xf32>
    %c1_i32_40 = arith.constant 1 : i32
    %79 = vector.broadcast %c1_i32_40 : i32 to vector<16x32xi32>
    %80 = arith.cmpi eq, %32, %79 : vector<16x32xi32>
    %c15_i32_41 = arith.constant 15 : i32
    %81 = tpu.dynamic_rotate %74 by %c15_i32_41 dim 0 : vector<16x32xf32>, i32 -> vector<16x32xf32>
    %cst_42 = arith.constant 0.000000e+00 : f32
    %82 = vector.broadcast %cst_42 : f32 to vector<16x32xf32>
    %83 = arith.select %80, %81, %82 : vector<16x32xi1>, vector<16x32xf32>
    %84 = arith.addf %78, %83 : vector<16x32xf32>
    %c2_i32 = arith.constant 2 : i32
    %85 = vector.broadcast %c2_i32 : i32 to vector<16x32xi32>
    %86 = arith.cmpi eq, %32, %85 : vector<16x32xi32>
    %c14_i32_43 = arith.constant 14 : i32
    %87 = tpu.dynamic_rotate %74 by %c14_i32_43 dim 0 : vector<16x32xf32>, i32 -> vector<16x32xf32>
    %cst_44 = arith.constant 0.000000e+00 : f32
    %88 = vector.broadcast %cst_44 : f32 to vector<16x32xf32>
    %89 = arith.select %86, %87, %88 : vector<16x32xi1>, vector<16x32xf32>
    %90 = arith.addf %84, %89 : vector<16x32xf32>
    %cst_45 = arith.constant 0.000000e+00 : f32
    %91 = vector.broadcast %cst_45 : f32 to vector<16x32xf32>
    %92 = arith.maximumf %90, %91 : vector<16x32xf32>
    %c1_i32_46 = arith.constant 1 : i32
    %93 = tpu.dynamic_rotate %92 by %c1_i32_46 dim 0 : vector<16x32xf32>, i32 -> vector<16x32xf32>
    %c15_i32_47 = arith.constant 15 : i32
    %94 = tpu.dynamic_rotate %92 by %c15_i32_47 dim 0 : vector<16x32xf32>, i32 -> vector<16x32xf32>
    %95 = tpu.concatenate %93, %92, %94 in 1 : vector<16x32xf32>, vector<16x32xf32>, vector<16x32xf32> -> vector<16x96xf32>
    %cst_48 = arith.constant dense<0.000000e+00> : vector<16x32xf32>
    %96 = tpu.matmul %95, %2, %cst_48 {dimension_numbers = #tpu.dot_dimension_numbers<[1], [0], [0], [1], [0, 0, 1, 1], [], []>} : vector<16x96xf32>, vector<96x32xf32>, vector<16x32xf32> -> vector<16x32xf32>
    %97 = arith.addf %96, %12 : vector<16x32xf32>
    %c3_i32 = arith.constant 3 : i32
    %98 = vector.broadcast %c3_i32 : i32 to vector<16x32xi32>
    %99 = arith.cmpi slt, %32, %98 : vector<16x32xi32>
    %cst_49 = arith.constant 0.000000e+00 : f32
    %100 = vector.broadcast %cst_49 : f32 to vector<16x32xf32>
    %101 = arith.select %99, %97, %100 : vector<16x32xi1>, vector<16x32xf32>
    %cst_50 = arith.constant 0.000000e+00 : f32
    %102 = vector.broadcast %cst_50 : f32 to vector<16x32xf32>
    %103 = arith.maximumf %101, %102 : vector<16x32xf32>
    %c1_i32_51 = arith.constant 1 : i32
    %104 = tpu.dynamic_rotate %103 by %c1_i32_51 dim 0 : vector<16x32xf32>, i32 -> vector<16x32xf32>
    %c15_i32_52 = arith.constant 15 : i32
    %105 = tpu.dynamic_rotate %103 by %c15_i32_52 dim 0 : vector<16x32xf32>, i32 -> vector<16x32xf32>
    %106 = tpu.concatenate %104, %103, %105 in 1 : vector<16x32xf32>, vector<16x32xf32>, vector<16x32xf32> -> vector<16x96xf32>
    %cst_53 = arith.constant dense<0.000000e+00> : vector<16x32xf32>
    %107 = tpu.matmul %106, %2, %cst_53 {dimension_numbers = #tpu.dot_dimension_numbers<[1], [0], [0], [1], [0, 0, 1, 1], [], []>} : vector<16x96xf32>, vector<96x32xf32>, vector<16x32xf32> -> vector<16x32xf32>
    %108 = arith.addf %107, %12 : vector<16x32xf32>
    %c3_i32_54 = arith.constant 3 : i32
    %109 = vector.broadcast %c3_i32_54 : i32 to vector<16x32xi32>
    %110 = arith.cmpi slt, %32, %109 : vector<16x32xi32>
    %cst_55 = arith.constant 0.000000e+00 : f32
    %111 = vector.broadcast %cst_55 : f32 to vector<16x32xf32>
    %112 = arith.select %110, %108, %111 : vector<16x32xi1>, vector<16x32xf32>
    %113 = arith.addf %112, %90 : vector<16x32xf32>
    %c15_i32_56 = arith.constant 15 : i32
    %114 = tpu.dynamic_rotate %113 by %c15_i32_56 dim 0 : vector<16x32xf32>, i32 -> vector<16x32xf32>
    %115 = arith.maximumf %113, %114 : vector<16x32xf32>
    %c14_i32_57 = arith.constant 14 : i32
    %116 = tpu.dynamic_rotate %113 by %c14_i32_57 dim 0 : vector<16x32xf32>, i32 -> vector<16x32xf32>
    %117 = arith.maximumf %115, %116 : vector<16x32xf32>
    %c0_i32_58 = arith.constant 0 : i32
    %118 = vector.broadcast %c0_i32_58 : i32 to vector<16x32xi32>
    %119 = arith.cmpi eq, %32, %118 : vector<16x32xi32>
    %cst_59 = arith.constant 0.000000e+00 : f32
    %120 = vector.broadcast %cst_59 : f32 to vector<16x32xf32>
    %121 = arith.select %119, %117, %120 : vector<16x32xi1>, vector<16x32xf32>
    %cst_60 = arith.constant 0.000000e+00 : f32
    %122 = vector.broadcast %cst_60 : f32 to vector<16x32xf32>
    %123 = arith.maximumf %121, %122 : vector<16x32xf32>
    %c1_i32_61 = arith.constant 1 : i32
    %124 = tpu.dynamic_rotate %123 by %c1_i32_61 dim 0 : vector<16x32xf32>, i32 -> vector<16x32xf32>
    %c15_i32_62 = arith.constant 15 : i32
    %125 = tpu.dynamic_rotate %123 by %c15_i32_62 dim 0 : vector<16x32xf32>, i32 -> vector<16x32xf32>
    %126 = tpu.concatenate %124, %123, %125 in 1 : vector<16x32xf32>, vector<16x32xf32>, vector<16x32xf32> -> vector<16x96xf32>
    %cst_63 = arith.constant dense<0.000000e+00> : vector<16x32xf32>
    %127 = tpu.matmul %126, %2, %cst_63 {dimension_numbers = #tpu.dot_dimension_numbers<[1], [0], [0], [1], [0, 0, 1, 1], [], []>} : vector<16x96xf32>, vector<96x32xf32>, vector<16x32xf32> -> vector<16x32xf32>
    %128 = arith.addf %127, %12 : vector<16x32xf32>
    %c1_i32_64 = arith.constant 1 : i32
    %129 = vector.broadcast %c1_i32_64 : i32 to vector<16x32xi32>
    %130 = arith.cmpi slt, %32, %129 : vector<16x32xi32>
    %cst_65 = arith.constant 0.000000e+00 : f32
    %131 = vector.broadcast %cst_65 : f32 to vector<16x32xf32>
    %132 = arith.select %130, %128, %131 : vector<16x32xi1>, vector<16x32xf32>
    %cst_66 = arith.constant 0.000000e+00 : f32
    %133 = vector.broadcast %cst_66 : f32 to vector<16x32xf32>
    %134 = arith.maximumf %132, %133 : vector<16x32xf32>
    %c1_i32_67 = arith.constant 1 : i32
    %135 = tpu.dynamic_rotate %134 by %c1_i32_67 dim 0 : vector<16x32xf32>, i32 -> vector<16x32xf32>
    %c15_i32_68 = arith.constant 15 : i32
    %136 = tpu.dynamic_rotate %134 by %c15_i32_68 dim 0 : vector<16x32xf32>, i32 -> vector<16x32xf32>
    %137 = tpu.concatenate %135, %134, %136 in 1 : vector<16x32xf32>, vector<16x32xf32>, vector<16x32xf32> -> vector<16x96xf32>
    %cst_69 = arith.constant dense<0.000000e+00> : vector<16x32xf32>
    %138 = tpu.matmul %137, %2, %cst_69 {dimension_numbers = #tpu.dot_dimension_numbers<[1], [0], [0], [1], [0, 0, 1, 1], [], []>} : vector<16x96xf32>, vector<96x32xf32>, vector<16x32xf32> -> vector<16x32xf32>
    %139 = arith.addf %138, %12 : vector<16x32xf32>
    %c1_i32_70 = arith.constant 1 : i32
    %140 = vector.broadcast %c1_i32_70 : i32 to vector<16x32xi32>
    %141 = arith.cmpi slt, %32, %140 : vector<16x32xi32>
    %cst_71 = arith.constant 0.000000e+00 : f32
    %142 = vector.broadcast %cst_71 : f32 to vector<16x32xf32>
    %143 = arith.select %141, %139, %142 : vector<16x32xi1>, vector<16x32xf32>
    %144 = arith.addf %143, %121 : vector<16x32xf32>
    %cst_72 = arith.constant dense<0.000000e+00> : vector<16x128xf32>
    %145 = tpu.matmul %144, %3, %cst_72 {dimension_numbers = #tpu.dot_dimension_numbers<[1], [0], [0], [1], [0, 0, 1, 1], [], []>} : vector<16x32xf32>, vector<32x128xf32>, vector<16x128xf32> -> vector<16x128xf32>
    %146 = arith.addf %145, %15 : vector<16x128xf32>
    %c0_73 = arith.constant 0 : index
    %c0_74 = arith.constant 0 : index
    %147 = vector.load %arg10[%c0_73, %c0_74] : memref<16x128xf32, #tpu.memory_space<vmem>>, vector<16x128xf32>
    tpu.vector_store %arg10[%c0_73, %c0_74], %146 {strides = array<i32>} : memref<16x128xf32, #tpu.memory_space<vmem>>, vector<16x128xf32>,
    return
  }
}

</mosaic_0001>

<bundles_post_ra>
// kernel: tpu_custom_call.1
= control target key start
LH: loop header
LB: loop body
LE: loop exit
PB: predicated region body
PF: predicated region fallthrough
CT: control target
= control target key end

     0   :  { %vm125_vm0 = vcmask 261120   ;;  %v1552_v3 = vmov 0   ;;  %s2147_s0 = inlined_call_operand.vmem [shape: f32[16,32], index: 0, kind: input, shape index: {}]   ;;  %s2148_s1 = inlined_call_operand.vmem [shape: f32[16,1], index: 1, kind: input, shape index: {}]   ;;  %s2149_s2 = inlined_call_operand.vmem [shape: f32[32,32], index: 2, kind: input, shape index: {}]   ;;  %s2150_s3 = inlined_call_operand.vmem [shape: f32[1,32], index: 3, kind: input, shape index: {}]   ;;  %s2151_s4 = inlined_call_operand.vmem [shape: f32[96,32], index: 4, kind: input, shape index: {}]   ;;  %s2152_s5 = inlined_call_operand.vmem [shape: f32[1,32], index: 5, kind: input, shape index: {}]   ;;  %s2153_s6 = inlined_call_operand.vmem [shape: f32[96,32], index: 6, kind: input, shape index: {}]   ;;  %s2154_s7 = inlined_call_operand.vmem [shape: f32[1,32], index: 7, kind: input, shape index: {}]   ;;  %s2155_s8 = inlined_call_operand.vmem [shape: f32[32,128], index: 8, kind: input, shape index: {}]   ;;  %s2156_s9 = inlined_call_operand.vmem [shape: f32[1,128], index: 9, kind: input, shape index: {}]   ;;  %s2157_s10 = inlined_call_operand.hbm [shape: f32[16,128], index: 10, kind: output, shape index: {}]  }
   0x1   :  { %v39_v0 = vld [vmem:[%s2149_s2 + $0x18] sm:$0xff]  ;;  %v38_v1 = vld [vmem:[%s2149_s2 + $0x10] sm:$0xff]  ;;  %v123_v2 = vld [vmem:[%s2147_s0] sm:$0xff]  ;;  %1525 = vset.pattern.permute.xlu0 %v1552_v3 }
   0x2   :  { %1308 = vmatprep.subr.mxu0 %v39_v0  ;;  %v37_v4 = vld [vmem:[%s2149_s2 + $0x8] sm:$0xff]  ;;  %1316 = vmatprep.mubr.msk.f32.mxu0 %vm125_vm0, %v123_v2  ;;  %v209_v5 = vld [vmem:[%s2148_s1] sm:$0xff] }
   0x3   :  { %1309 = vmatpush3.msra.mxu0 %v39_v0 }
   0x4   :  { %15 = vsyncpa [#allocation3], 0  ;;  %1310 = vmatprep.subr.mxu0 %v38_v1  ;;  %213 = vperm.xlu0 %1525, %v209_v5   ;;  %v36_v6 = vld [vmem:[%s2149_s2] sm:$0xff]  ;;  %v210_v7 = vld [vmem:[%s2148_s1 + $0x8] sm:$0xff]  ;;  %v96_v24 = vlaneseq  ;;  %s1554_s2 = smov 32   ;;  %vm251_vm3 = vcmask 523264  }
   0x5   :  { %1311 = vmatpush3.msra.mxu0 %v38_v1  ;;  %v124_v8 = vld [vmem:[%s2147_s0 + $0x8] sm:$0xff]  ;;  %v51_v9 = vld [vmem:[%s2151_s4 + $0x58] sm:$0xff]  ;;  %v50_v10 = vld [vmem:[%s2151_s4 + $0x50] sm:$0xff]  ;;  %vm254_vm4 = vcmask 785408   ;;  %s1555_s18 = smov [#allocation2]  }
   0x6   :  { %1312 = vmatprep.subr.mxu0 %v37_v4  ;;  %1319 = vmatprep.subr.mxu1 %v51_v9  ;;  %v49_v11 = vld [vmem:[%s2151_s4 + $0x48] sm:$0xff]  ;;  %v48_v12 = vld [vmem:[%s2151_s4 + $0x40] sm:$0xff]  ;;  %v47_v13 = vld [vmem:[%s2151_s4 + $0x38] sm:$0xff]  ;;  %v1678_v30 = vshrl.u32 %v96_v24, 7  ;;  %s1165_s19 = sshll.u32 %s1555_s18, 4  ;;  %s1166_s19 = int_to_ptr.vmem [resolvable:$true] %s1165_s19 }
   0x7   :  { %1313 = vmatpush3.msra.mxu0 %v37_v4  ;;  %1320 = vmatpush3.msra.mxu1 %v51_v9  ;;  %v46_v14 = vld [vmem:[%s2151_s4 + $0x30] sm:$0xff]  ;;  %v45_v15 = vld [vmem:[%s2151_s4 + $0x28] sm:$0xff]  ;;  %v44_v16 = vld [vmem:[%s2151_s4 + $0x20] sm:$0xff]  ;;  %s1530_s20 = scalar_lea.vmem %s1166_s19, 256  ;;  %p1535_p1 = scmp.lt.s32.totalorder %s1166_s19, %s1166_s19 }
   0x8   :  { %1314 = vmatprep.subr.mxu0 %v36_v6  ;;  %218 = vperm.xlu0 %1525, %v210_v7   ;;  %v1176_v17 = vld [vmem:[%s2150_s3] ss:$0 sm:$0xff]  ;;  %v43_v23 = vld [vmem:[%s2151_s4 + $0x18] sm:$0xff]  ;;  %v42_v25 = vld [vmem:[%s2151_s4 + $0x10] sm:$0xff]  ;;  %vm225_vm1 = vcmp.lt.s32.totalorder %v1678_v30, 7  ;;  %vm230_vm2 = vcmp.lt.s32.totalorder %v1678_v30, 6  ;;  %p1531_p0 = scmp.ne.s32.totalorder %s1166_s19, %s1530_s20  ;;  %p1536_p2 = scmp.lt.s32.totalorder %s1530_s20, %s1530_s20 }
   0x9   :  { %1315 = vmatpush3.msra.mxu0 %v36_v6  ;;  %1321 = vmatprep.subr.mxu1 %v50_v10  ;;  %v41_v26 = vld [vmem:[%s2151_s4 + $0x8] sm:$0xff]  ;;  %v40_v27 = vld [vmem:[%s2151_s4] sm:$0xff]  ;;  %s1553_s4 = smov 64   ;;  %v1703_v50 = vld [vmem:[%s2153_s6 + $0x58] sm:$0xff]  ;;  %v98_v58 = vadd.s32 8, %v1678_v30  ;;  %v1804_v0 = vand.u32 7, %v1678_v30 }
   0xa   :  { %1317 = vmatmul.mubr.msk.f32.vlgmr.msra.gmra.mxu0 %vm125_vm0, %v124_v8  ;;  %1322 = vmatpush3.msra.mxu1 %v50_v10  ;;  %v1708_v51 = vld [vmem:[%s2153_s6 + $0x50] sm:$0xff]  ;;  %v1716_v52 = vld [vmem:[%s2153_s6 + $0x48] sm:$0xff]  ;;  %v1725_v53 = vld [vmem:[%s2153_s6 + $0x40] sm:$0xff]  ;;  %vm344_vm7 = vcmp.lt.s32.totalorder %v1678_v30, 1  ;;  %p1537_p3 = por %p1536_p2, %p1535_p1 }
   0xb   :  { %1323 = vmatprep.subr.mxu1 %v49_v11  ;;  %1346 = vmatprep.subr.mxu0 %v1703_v50  ;;  %v1734_v54 = vld [vmem:[%s2153_s6 + $0x38] sm:$0xff]  ;;  %v1743_v55 = vld [vmem:[%s2153_s6 + $0x30] sm:$0xff]  ;;  %v1752_v56 = vld [vmem:[%s2153_s6 + $0x28] sm:$0xff]  ;;  %v1794_v62 = vand.u32 7, %v98_v58  ;;  %vm336_vm6 = vcmp.lt.s32.totalorder %v1804_v0, 6  ;;  %vm579_vm10 = vcmp.eq.s32.totalorder %v1804_v0, 0 }
   0xc   :  { %1324 = vmatpush3.msra.mxu1 %v49_v11  ;;  %1347 = vmatpush3.msra.mxu0 %v1703_v50  ;;  %v1761_v57 = vld [vmem:[%s2153_s6 + $0x20] sm:$0xff]  ;;  %v1776_v59 = vld [vmem:[%s2153_s6 + $0x18] sm:$0xff]  ;;  %v1784_v60 = vld [vmem:[%s2153_s6 + $0x10] sm:$0xff]  ;;  %vm583_vm11 = vcmp.eq.s32.totalorder %v1804_v0, 1  ;;  %vm593_vm13 = vcmp.eq.s32.totalorder %v1804_v0, 2  ;;  %vm714_vm15 = vcmp.lt.s32.totalorder %v1804_v0, 3  ;;  %p1538_p4 = pnand %p1537_p3, %p1531_p0 }
   0xd   :  { %1325 = vmatprep.subr.mxu1 %v48_v12  ;;  %1348 = vmatprep.subr.mxu0 %v1708_v51  ;;  %v1791_v61 = vld [vmem:[%s2153_s6 + $0x8] sm:$0xff]  ;;  %v1177_v63 = vld [vmem:[%s2152_s5] ss:$0 sm:$0xff]  ;;  %vm337_vm5 = vcmp.lt.s32.totalorder %v1794_v62, 6  ;;  %vm580_vm8 = vcmp.eq.s32.totalorder %v1794_v62, 0  ;;  %vm584_vm9 = vcmp.eq.s32.totalorder %v1794_v62, 1 }
   0xe   :  { %1326 = vmatpush3.msra.mxu1 %v48_v12  ;;  %1349 = vmatpush3.msra.mxu0 %v1708_v51  ;;  %v1810_v1 = vld [vmem:[%s2153_s6] sm:$0xff]  ;;  %vm594_vm12 = vcmp.eq.s32.totalorder %v1794_v62, 2  ;;  %vm715_vm14 = vcmp.lt.s32.totalorder %v1794_v62, 3  ;;  %v67_v30 = vld [vmem:[%s2155_s8 + $0x18] sm:$0xff] }
   0xf   :  { %1327 = vmatprep.subr.mxu1 %v47_v13  ;;  %1350 = vmatprep.subr.mxu0 %v1716_v52 }
  0x10   :  { %1328 = vmatpush3.msra.mxu1 %v47_v13  ;;  %1351 = vmatpush3.msra.mxu0 %v1716_v52 }
  0x11   :  { %1329 = vmatprep.subr.mxu1 %v46_v14  ;;  %1352 = vmatprep.subr.mxu0 %v1725_v53 }
  0x12   :  { %1330 = vmatpush3.msra.mxu1 %v46_v14  ;;  %1353 = vmatpush3.msra.mxu0 %v1725_v53 }
  0x13   :  { %1331 = vmatprep.subr.mxu1 %v45_v15  ;;  %1354 = vmatprep.subr.mxu0 %v1734_v54 }
  0x14   :  { %1332 = vmatpush3.msra.mxu1 %v45_v15  ;;  %1355 = vmatpush3.msra.mxu0 %v1734_v54 }
  0x15   :  { %1333 = vmatprep.subr.mxu1 %v44_v16  ;;  %1356 = vmatprep.subr.mxu0 %v1743_v55 }
  0x16   :  { %1334 = vmatpush3.msra.mxu1 %v44_v16  ;;  %1357 = vmatpush3.msra.mxu0 %v1743_v55 }
  0x17   :  { %1335 = vmatprep.subr.mxu1 %v43_v23  ;;  %1358 = vmatprep.subr.mxu0 %v1752_v56 }
  0x18   :  { %1336 = vmatpush3.msra.mxu1 %v43_v23  ;;  %1359 = vmatpush3.msra.mxu0 %v1752_v56 }
  0x19   :  { %1337 = vmatprep.subr.mxu1 %v42_v25  ;;  %1360 = vmatprep.subr.mxu0 %v1761_v57 }
  0x1a   :  { %1338 = vmatpush3.msra.mxu1 %v42_v25  ;;  %1361 = vmatpush3.msra.mxu0 %v1761_v57 }
  0x1b   :  { %1339 = vmatprep.subr.mxu1 %v41_v26  ;;  %1362 = vmatprep.subr.mxu0 %v1776_v59 }
  0x1c   :  { %1340 = vmatpush3.msra.mxu1 %v41_v26  ;;  %1363 = vmatpush3.msra.mxu0 %v1776_v59  ;;  %v1871_v26 = vld [vmem:[%s2154_s7] ss:$0 sm:$0xff] }
  0x1d   :  { %1341 = vmatprep.subr.mxu1 %v40_v27  ;;  %1364 = vmatprep.subr.mxu0 %v1784_v60 }
  0x1e   :  { %1342 = vmatpush3.msra.mxu1 %v40_v27  ;;  %1365 = vmatpush3.msra.mxu0 %v1784_v60 }
  0x1f   :  { %1373 = vmatprep.subr.mxu1 %v1703_v50  ;;  %1366 = vmatprep.subr.mxu0 %v1791_v61 }
  0x20   :  { %1367 = vmatpush3.msra.mxu0 %v1791_v61 }
  0x21   :  { %1368 = vmatprep.subr.mxu0 %v1810_v1 }
  0x22   :  { %1369 = vmatpush3.msra.mxu0 %v1810_v1 }
  0x23   :  { %1400 = vmatprep.subr.mxu0 %v1703_v50 }
  0x7f   :  { %v214_v22 = vpop.permute.xlu0 %213 }
  0x83   :  { %v219_v29 = vpop.permute.xlu0 %218 }
  0xca   :  { %v1318_v18 = vpop.f32.mrf.mxu0 }
  0xcb   :  { %v204_v19 = vadd.f32 %v1318_v18, %v1176_v17 }
  0xcc   :  { %v198_v20 = vpop.f32.mrf.mxu0 }
  0xcd   :  { %1526 = vtanh.f32 %v204_v19  ;;  %v199_v21 = vadd.f32 %v1176_v17, %v198_v20 }
  0xcf   :  { %1528 = vtanh.f32 %v199_v21 }
  0xda   :  { %v1527_v28 = vpop.eup %1526 }
  0xdb   :  { %v222_v31 = vmul.f32 %v1527_v28, %v219_v29 }
  0xdc   :  { %v1529_v32 = vpop.eup %1528 }
  0xdd   :  { %v221_v33 = vmul.f32 %v1529_v32, %v214_v22  ;;  %v229_v35 = vrot.slane %v222_v31, 2  ;;  %v224_v37 = vrot.slane %v222_v31, 1 }
  0xdf   :  { %v228_v34 = vrot.slane %v221_v33, 2  ;;  %v223_v36 = vrot.slane %v221_v33, 1 }
  0xe1   :  { %v231_v38 = vsel %vm230_vm2, %v228_v34, %v229_v35  ;;  %v226_v39 = vsel %vm225_vm1, %v223_v36, %v224_v37  ;;  %v227_v40 = vsel %vm225_vm1, %v224_v37, %v223_v36  ;;  %v232_v41 = vsel %vm230_vm2, %v229_v35, %v228_v34 }
  0xe2   :  { %243 = vrot.lane.b32.xlu0 %v231_v38, %s1553_s4  ;;  %235 = vrot.lane.b32.xlu1 %v226_v39, %s1554_s2 }
  0xe6   :  { %237 = vrot.lane.b32.xlu1 %v227_v40, %s1554_s2 }
  0xea   :  { %245 = vrot.lane.b32.xlu1 %v232_v41, %s1553_s4 }
 0x154   :  { %v244_v42 = vpop.permute.xlu0 %243  ;;  %v236_v43 = vpop.permute.xlu1 %235 }
 0x155   :  { %v249_v44 = vsel %vm125_vm0, %v221_v33, %v236_v43 }
 0x156   :  { %v252_v45 = vsel %vm251_vm3, %v249_v44, %v244_v42 }
 0x157   :  { %1343 = vmatprep.mubr.msk.f32.mxu1 %vm254_vm4, %v252_v45 }
 0x158   :  { %v238_v46 = vpop.permute.xlu1 %237 }
 0x159   :  { %v250_v47 = vsel %vm125_vm0, %v222_v31, %v238_v46 }
 0x15c   :  { %v246_v48 = vpop.permute.xlu1 %245 }
 0x15d   :  { %v253_v49 = vsel %vm251_vm3, %v250_v47, %v246_v48 }
 0x15e   :  { %1344 = vmatmul.mubr.msk.f32.vlgmr.msra.gmra.mxu1 %vm254_vm4, %v253_v49 }
 0x15f   :  { %1374 = vmatpush3.msra.mxu1 %v1703_v50 }
 0x160   :  { %1375 = vmatprep.subr.mxu1 %v1708_v51 }
 0x161   :  { %1376 = vmatpush3.msra.mxu1 %v1708_v51 }
 0x162   :  { %1377 = vmatprep.subr.mxu1 %v1716_v52 }
 0x163   :  { %1378 = vmatpush3.msra.mxu1 %v1716_v52 }
 0x164   :  { %1379 = vmatprep.subr.mxu1 %v1725_v53 }
 0x165   :  { %1380 = vmatpush3.msra.mxu1 %v1725_v53 }
 0x166   :  { %1381 = vmatprep.subr.mxu1 %v1734_v54 }
 0x167   :  { %1382 = vmatpush3.msra.mxu1 %v1734_v54 }
 0x168   :  { %1383 = vmatprep.subr.mxu1 %v1743_v55 }
 0x169   :  { %1384 = vmatpush3.msra.mxu1 %v1743_v55 }
 0x16a   :  { %1385 = vmatprep.subr.mxu1 %v1752_v56 }
 0x16b   :  { %1386 = vmatpush3.msra.mxu1 %v1752_v56 }
 0x16c   :  { %1387 = vmatprep.subr.mxu1 %v1761_v57 }
 0x16d   :  { %1388 = vmatpush3.msra.mxu1 %v1761_v57 }
 0x16e   :  { %1389 = vmatprep.subr.mxu1 %v1776_v59 }
 0x16f   :  { %1390 = vmatpush3.msra.mxu1 %v1776_v59 }
 0x170   :  { %1391 = vmatprep.subr.mxu1 %v1784_v60 }
 0x171   :  { %1392 = vmatpush3.msra.mxu1 %v1784_v60 }
 0x172   :  { %1393 = vmatprep.subr.mxu1 %v1791_v61 }
 0x173   :  { %1394 = vmatpush3.msra.mxu1 %v1791_v61 }
 0x174   :  { %1395 = vmatprep.subr.mxu1 %v1810_v1 }
 0x175   :  { %1396 = vmatpush3.msra.mxu1 %v1810_v1 }
 0x176   :  { %1427 = vmatprep.subr.mxu1 %v1703_v50 }
 0x21e   :  { %v1345_v2 = vpop.f32.mrf.mxu1 }
 0x21f   :  { %v333_v3 = vadd.f32 %v1345_v2, %v1177_v63 }
 0x220   :  { %v327_v4 = vpop.f32.mrf.mxu1 }
 0x221   :  { %v339_v5 = vsel %vm337_vm5, %v333_v3, 0.0  ;;  %v328_v6 = vadd.f32 %v1177_v63, %v327_v4 }
 0x222   :  { %v341_v7 = vmax.f32 %v339_v5, 0.0 }
 0x223   :  { %v338_v8 = vsel %vm336_vm6, %v328_v6, 0.0 }
 0x224   :  { %v340_v9 = vmax.f32 %v338_v8, 0.0  ;;  %355 = vrot.lane.b32.xlu1 %v341_v7, %s1554_s2  ;;  %v343_v10 = vrot.slane %v341_v7, 7  ;;  %v348_v13 = vrot.slane %v341_v7, 1 }
 0x226   :  { %v342_v11 = vrot.slane %v340_v9, 7  ;;  %353 = vrot.lane.b32.xlu0 %v340_v9, %s1554_s2  ;;  %v347_v12 = vrot.slane %v340_v9, 1 }
 0x228   :  { %v350_v14 = vsel %vm225_vm1, %v348_v13, %v347_v12  ;;  %v349_v15 = vsel %vm225_vm1, %v347_v12, %v348_v13  ;;  %v345_v16 = vsel %vm344_vm7, %v342_v11, %v343_v10  ;;  %v346_v17 = vsel %vm344_vm7, %v343_v10, %v342_v11 }
 0x229   :  { %363 = vrot.lane.b32.xlu1 %v350_v14, %s1553_s4 }
 0x22a   :  { %361 = vrot.lane.b32.xlu0 %v349_v15, %s1553_s4 }
 0x296   :  { %v356_v18 = vpop.permute.xlu1 %355 }
 0x297   :  { %v368_v23 = vsel %vm125_vm0, %v345_v16, %v356_v18 }
 0x298   :  { %v354_v19 = vpop.permute.xlu0 %353 }
 0x299   :  { %v367_v21 = vsel %vm125_vm0, %v346_v17, %v354_v19 }
 0x29b   :  { %v364_v20 = vpop.permute.xlu1 %363 }
 0x29c   :  { %v362_v22 = vpop.permute.xlu0 %361  ;;  %v370_v25 = vsel %vm251_vm3, %v368_v23, %v364_v20 }
 0x29d   :  { %v369_v24 = vsel %vm251_vm3, %v367_v21, %v362_v22 }
 0x29e   :  { %1370 = vmatprep.mubr.msk.f32.mxu0 %vm254_vm4, %v369_v24 }
 0x29f   :  { %1371 = vmatmul.mubr.msk.f32.vlgmr.msra.gmra.mxu0 %vm254_vm4, %v370_v25 }
 0x2a0   :  { %1401 = vmatpush3.msra.mxu0 %v1703_v50 }
 0x2a1   :  { %1402 = vmatprep.subr.mxu0 %v1708_v51 }
 0x2a2   :  { %1403 = vmatpush3.msra.mxu0 %v1708_v51 }
 0x2a3   :  { %1404 = vmatprep.subr.mxu0 %v1716_v52 }
 0x2a4   :  { %1405 = vmatpush3.msra.mxu0 %v1716_v52 }
 0x2a5   :  { %1406 = vmatprep.subr.mxu0 %v1725_v53 }
 0x2a6   :  { %1407 = vmatpush3.msra.mxu0 %v1725_v53 }
 0x2a7   :  { %1408 = vmatprep.subr.mxu0 %v1734_v54 }
 0x2a8   :  { %1409 = vmatpush3.msra.mxu0 %v1734_v54 }
 0x2a9   :  { %1410 = vmatprep.subr.mxu0 %v1743_v55 }
 0x2aa   :  { %1411 = vmatpush3.msra.mxu0 %v1743_v55 }
 0x2ab   :  { %1412 = vmatprep.subr.mxu0 %v1752_v56 }
 0x2ac   :  { %1413 = vmatpush3.msra.mxu0 %v1752_v56 }
 0x2ad   :  { %1414 = vmatprep.subr.mxu0 %v1761_v57 }
 0x2ae   :  { %1415 = vmatpush3.msra.mxu0 %v1761_v57 }
 0x2af   :  { %1416 = vmatprep.subr.mxu0 %v1776_v59 }
 0x2b0   :  { %1417 = vmatpush3.msra.mxu0 %v1776_v59 }
 0x2b1   :  { %1418 = vmatprep.subr.mxu0 %v1784_v60 }
 0x2b2   :  { %1419 = vmatpush3.msra.mxu0 %v1784_v60 }
 0x2b3   :  { %1420 = vmatprep.subr.mxu0 %v1791_v61 }
 0x2b4   :  { %1421 = vmatpush3.msra.mxu0 %v1791_v61 }
 0x2b5   :  { %1422 = vmatprep.subr.mxu0 %v1810_v1 }
 0x2b6   :  { %1423 = vmatpush3.msra.mxu0 %v1810_v1 }
 0x2b7   :  { %1454 = vmatprep.subr.mxu0 %v1703_v50 }
 0x35f   :  { %v1372_v27 = vpop.f32.mrf.mxu0 }
 0x360   :  { %v449_v28 = vadd.f32 %v1372_v27, %v1871_v26 }
 0x361   :  { %v443_v29 = vpop.f32.mrf.mxu0 }
 0x362   :  { %v453_v31 = vsel %vm337_vm5, %v449_v28, 0.0  ;;  %v444_v32 = vadd.f32 %v1871_v26, %v443_v29 }
 0x363   :  { %v455_v33 = vmax.f32 %v453_v31, 0.0 }
 0x364   :  { %v452_v34 = vsel %vm336_vm6, %v444_v32, 0.0 }
 0x365   :  { %v454_v35 = vmax.f32 %v452_v34, 0.0  ;;  %468 = vrot.lane.b32.xlu1 %v455_v33, %s1554_s2  ;;  %v457_v36 = vrot.slane %v455_v33, 7  ;;  %v461_v39 = vrot.slane %v455_v33, 1 }
 0x367   :  { %v456_v37 = vrot.slane %v454_v35, 7  ;;  %466 = vrot.lane.b32.xlu0 %v454_v35, %s1554_s2  ;;  %v460_v38 = vrot.slane %v454_v35, 1 }
 0x369   :  { %v463_v40 = vsel %vm225_vm1, %v461_v39, %v460_v38  ;;  %v462_v41 = vsel %vm225_vm1, %v460_v38, %v461_v39  ;;  %v458_v42 = vsel %vm344_vm7, %v456_v37, %v457_v36  ;;  %v459_v43 = vsel %vm344_vm7, %v457_v36, %v456_v37 }
 0x36a   :  { %476 = vrot.lane.b32.xlu1 %v463_v40, %s1553_s4 }
 0x36b   :  { %474 = vrot.lane.b32.xlu0 %v462_v41, %s1553_s4 }
 0x3d7   :  { %v469_v44 = vpop.permute.xlu1 %468 }
 0x3d8   :  { %v481_v49 = vsel %vm125_vm0, %v458_v42, %v469_v44 }
 0x3d9   :  { %v467_v45 = vpop.permute.xlu0 %466 }
 0x3da   :  { %v480_v47 = vsel %vm125_vm0, %v459_v43, %v467_v45 }
 0x3dc   :  { %v477_v46 = vpop.permute.xlu1 %476 }
 0x3dd   :  { %v475_v48 = vpop.permute.xlu0 %474  ;;  %v483_v63 = vsel %vm251_vm3, %v481_v49, %v477_v46 }
 0x3de   :  { %v482_v58 = vsel %vm251_vm3, %v480_v47, %v475_v48 }
 0x3df   :  { %1397 = vmatprep.mubr.msk.f32.mxu1 %vm254_vm4, %v482_v58 }
 0x3e0   :  { %1398 = vmatmul.mubr.msk.f32.vlgmr.msra.gmra.mxu1 %vm254_vm4, %v483_v63 }
 0x3e1   :  { %1428 = vmatpush3.msra.mxu1 %v1703_v50 }
 0x3e2   :  { %1429 = vmatprep.subr.mxu1 %v1708_v51 }
 0x3e3   :  { %1430 = vmatpush3.msra.mxu1 %v1708_v51 }
 0x3e4   :  { %1431 = vmatprep.subr.mxu1 %v1716_v52 }
 0x3e5   :  { %1432 = vmatpush3.msra.mxu1 %v1716_v52 }
 0x3e6   :  { %1433 = vmatprep.subr.mxu1 %v1725_v53 }
 0x3e7   :  { %1434 = vmatpush3.msra.mxu1 %v1725_v53 }
 0x3e8   :  { %1435 = vmatprep.subr.mxu1 %v1734_v54 }
 0x3e9   :  { %1436 = vmatpush3.msra.mxu1 %v1734_v54 }
 0x3ea   :  { %1437 = vmatprep.subr.mxu1 %v1743_v55 }
 0x3eb   :  { %1438 = vmatpush3.msra.mxu1 %v1743_v55 }
 0x3ec   :  { %1439 = vmatprep.subr.mxu1 %v1752_v56 }
 0x3ed   :  { %1440 = vmatpush3.msra.mxu1 %v1752_v56 }
 0x3ee   :  { %1441 = vmatprep.subr.mxu1 %v1761_v57 }
 0x3ef   :  { %1442 = vmatpush3.msra.mxu1 %v1761_v57 }
 0x3f0   :  { %1443 = vmatprep.subr.mxu1 %v1776_v59 }
 0x3f1   :  { %1444 = vmatpush3.msra.mxu1 %v1776_v59 }
 0x3f2   :  { %1445 = vmatprep.subr.mxu1 %v1784_v60 }
 0x3f3   :  { %1446 = vmatpush3.msra.mxu1 %v1784_v60 }
 0x3f4   :  { %1447 = vmatprep.subr.mxu1 %v1791_v61 }
 0x3f5   :  { %1448 = vmatpush3.msra.mxu1 %v1791_v61 }
 0x3f6   :  { %1449 = vmatprep.subr.mxu1 %v1810_v1 }
 0x3f7   :  { %1450 = vmatpush3.msra.mxu1 %v1810_v1 }
 0x3f8   :  { %1481 = vmatprep.subr.mxu1 %v1703_v50 }
 0x4a0   :  { %v1399_v2 = vpop.f32.mrf.mxu1 }
 0x4a1   :  { %v562_v3 = vadd.f32 %v1399_v2, %v1871_v26 }
 0x4a2   :  { %v556_v4 = vpop.f32.mrf.mxu1 }
 0x4a3   :  { %v566_v5 = vsel %vm337_vm5, %v562_v3, 0.0  ;;  %v557_v6 = vadd.f32 %v1871_v26, %v556_v4  ;;  %vm958_vm5 = vcmp.lt.s32.totalorder %v1804_v0, 1 }
 0x4a4   :  { %v568_v8 = vrot.slane %v566_v5, 1  ;;  %v574_v11 = vrot.slane %v566_v5, 2 }
 0x4a5   :  { %v565_v7 = vsel %vm336_vm6, %v557_v6, 0.0 }
 0x4a6   :  { %v567_v9 = vrot.slane %v565_v7, 1  ;;  %v573_v10 = vrot.slane %v565_v7, 2 }
 0x4a8   :  { %v569_v12 = vsel %vm225_vm1, %v567_v9, %v568_v8  ;;  %v570_v13 = vsel %vm225_vm1, %v568_v8, %v567_v9  ;;  %v575_v16 = vsel %vm230_vm2, %v573_v10, %v574_v11  ;;  %v576_v17 = vsel %vm230_vm2, %v574_v11, %v573_v10 }
 0x4a9   :  { %v571_v14 = vmax.f32 %v565_v7, %v569_v12  ;;  %v572_v15 = vmax.f32 %v566_v5, %v570_v13 }
 0x4ab   :  { %v577_v18 = vmax.f32 %v571_v14, %v575_v16  ;;  %v578_v19 = vmax.f32 %v572_v15, %v576_v17 }
 0x4ad   :  { %v585_v20 = vrot.slane %v577_v18, 1  ;;  %v595_v21 = vrot.slane %v577_v18, 2  ;;  %v586_v22 = vrot.slane %v578_v19, 1  ;;  %v596_v23 = vrot.slane %v578_v19, 2 }
 0x4ae   :  { %v582_v24 = vsel %vm580_vm8, %v578_v19, 0.0  ;;  %v581_v27 = vsel %vm579_vm10, %v577_v18, 0.0 }
 0x4af   :  { %v588_v25 = vsel %vm225_vm1, %v586_v22, %v585_v20  ;;  %v587_v28 = vsel %vm225_vm1, %v585_v20, %v586_v22  ;;  %v598_v31 = vsel %vm230_vm2, %v596_v23, %v595_v21  ;;  %v597_v33 = vsel %vm230_vm2, %v595_v21, %v596_v23 }
 0x4b0   :  { %v590_v29 = vsel %vm584_vm9, %v588_v25, 0.0  ;;  %v589_v32 = vsel %vm583_vm11, %v587_v28, 0.0  ;;  %v600_v36 = vsel %vm594_vm12, %v598_v31, 0.0  ;;  %v599_v37 = vsel %vm593_vm13, %v597_v33, 0.0 }
 0x4b1   :  { %v592_v34 = vadd.f32 %v590_v29, %v582_v24  ;;  %v591_v35 = vadd.f32 %v589_v32, %v581_v27 }
 0x4b3   :  { %v1953_v38 = vadd.f32 %v600_v36, %v592_v34  ;;  %v1955_v39 = vadd.f32 %v599_v37, %v591_v35 }
 0x4b5   :  { %v604_v40 = vmax.f32 %v1953_v38, 0.0  ;;  %v603_v41 = vmax.f32 %v1955_v39, 0.0 }
 0x4b7   :  { %617 = vrot.lane.b32.xlu1 %v604_v40, %s1554_s2  ;;  %615 = vrot.lane.b32.xlu0 %v603_v41, %s1554_s2  ;;  %v609_v42 = vrot.slane %v603_v41, 1  ;;  %v610_v43 = vrot.slane %v604_v40, 1  ;;  %v605_v44 = vrot.slane %v603_v41, 7  ;;  %v606_v45 = vrot.slane %v604_v40, 7 }
 0x4b9   :  { %v612_v46 = vsel %vm225_vm1, %v610_v43, %v609_v42  ;;  %v611_v47 = vsel %vm225_vm1, %v609_v42, %v610_v43  ;;  %v607_v48 = vsel %vm344_vm7, %v605_v44, %v606_v45  ;;  %v608_v49 = vsel %vm344_vm7, %v606_v45, %v605_v44 }
 0x4bb   :  { %625 = vrot.lane.b32.xlu1 %v612_v46, %s1553_s4  ;;  %623 = vrot.lane.b32.xlu0 %v611_v47, %s1553_s4 }
 0x529   :  { %v618_v58 = vpop.permute.xlu1 %617  ;;  %v616_v63 = vpop.permute.xlu0 %615 }
 0x52a   :  { %v630_v2 = vsel %vm125_vm0, %v607_v48, %v618_v58  ;;  %v629_v3 = vsel %vm125_vm0, %v608_v49, %v616_v63 }
 0x52d   :  { %v626_v4 = vpop.permute.xlu1 %625  ;;  %v624_v5 = vpop.permute.xlu0 %623 }
 0x52e   :  { %v632_v6 = vsel %vm251_vm3, %v630_v2, %v626_v4  ;;  %v631_v7 = vsel %vm251_vm3, %v629_v3, %v624_v5 }
 0x52f   :  { %1424 = vmatprep.mubr.msk.f32.mxu0 %vm254_vm4, %v631_v7 }
 0x530   :  { %1425 = vmatmul.mubr.msk.f32.vlgmr.msra.gmra.mxu0 %vm254_vm4, %v632_v6 }
 0x531   :  { %1455 = vmatpush3.msra.mxu0 %v1703_v50 }
 0x532   :  { %1456 = vmatprep.subr.mxu0 %v1708_v51 }
 0x533   :  { %1457 = vmatpush3.msra.mxu0 %v1708_v51 }
 0x534   :  { %1458 = vmatprep.subr.mxu0 %v1716_v52 }
 0x535   :  { %1459 = vmatpush3.msra.mxu0 %v1716_v52 }
 0x536   :  { %1460 = vmatprep.subr.mxu0 %v1725_v53 }
 0x537   :  { %1461 = vmatpush3.msra.mxu0 %v1725_v53 }
 0x538   :  { %1462 = vmatprep.subr.mxu0 %v1734_v54 }
 0x539   :  { %1463 = vmatpush3.msra.mxu0 %v1734_v54 }
 0x53a   :  { %1464 = vmatprep.subr.mxu0 %v1743_v55 }
 0x53b   :  { %1465 = vmatpush3.msra.mxu0 %v1743_v55 }
 0x53c   :  { %1466 = vmatprep.subr.mxu0 %v1752_v56 }
 0x53d   :  { %1467 = vmatpush3.msra.mxu0 %v1752_v56 }
 0x53e   :  { %1468 = vmatprep.subr.mxu0 %v1761_v57 }
 0x53f   :  { %1469 = vmatpush3.msra.mxu0 %v1761_v57 }
 0x540   :  { %1470 = vmatprep.subr.mxu0 %v1776_v59 }
 0x541   :  { %1471 = vmatpush3.msra.mxu0 %v1776_v59 }
 0x542   :  { %1472 = vmatprep.subr.mxu0 %v1784_v60 }
 0x543   :  { %1473 = vmatpush3.msra.mxu0 %v1784_v60 }
 0x544   :  { %1474 = vmatprep.subr.mxu0 %v1791_v61 }
 0x545   :  { %1475 = vmatpush3.msra.mxu0 %v1791_v61 }
 0x546   :  { %1476 = vmatprep.subr.mxu0 %v1810_v1 }
 0x547   :  { %1477 = vmatpush3.msra.mxu0 %v1810_v1 }
 0x548   :  { %1508 = vmatprep.subr.mxu0 %v67_v30 }
 0x5f0   :  { %v1426_v8 = vpop.f32.mrf.mxu0 }
 0x5f1   :  { %v711_v9 = vadd.f32 %v1426_v8, %v1871_v26 }
 0x5f2   :  { %v705_v10 = vpop.f32.mrf.mxu0 }
 0x5f3   :  { %v717_v11 = vsel %vm715_vm14, %v711_v9, 0.0  ;;  %v706_v12 = vadd.f32 %v1871_v26, %v705_v10 }
 0x5f4   :  { %v719_v13 = vmax.f32 %v717_v11, 0.0 }
 0x5f5   :  { %v716_v14 = vsel %vm714_vm15, %v706_v12, 0.0 }
 0x5f6   :  { %v718_v15 = vmax.f32 %v716_v14, 0.0  ;;  %732 = vrot.lane.b32.xlu1 %v719_v13, %s1554_s2  ;;  %v721_v16 = vrot.slane %v719_v13, 7  ;;  %v725_v19 = vrot.slane %v719_v13, 1 }
 0x5f8   :  { %v720_v17 = vrot.slane %v718_v15, 7  ;;  %730 = vrot.lane.b32.xlu0 %v718_v15, %s1554_s2  ;;  %v724_v18 = vrot.slane %v718_v15, 1 }
 0x5fa   :  { %v727_v20 = vsel %vm225_vm1, %v725_v19, %v724_v18  ;;  %v726_v21 = vsel %vm225_vm1, %v724_v18, %v725_v19  ;;  %v722_v22 = vsel %vm344_vm7, %v720_v17, %v721_v16  ;;  %v723_v23 = vsel %vm344_vm7, %v721_v16, %v720_v17 }
 0x5fb   :  { %740 = vrot.lane.b32.xlu1 %v727_v20, %s1553_s4 }
 0x5fc   :  { %738 = vrot.lane.b32.xlu0 %v726_v21, %s1553_s4 }
 0x668   :  { %v733_v24 = vpop.permute.xlu1 %732 }
 0x669   :  { %v745_v31 = vsel %vm125_vm0, %v722_v22, %v733_v24 }
 0x66a   :  { %v731_v25 = vpop.permute.xlu0 %730 }
 0x66b   :  { %v744_v28 = vsel %vm125_vm0, %v723_v23, %v731_v25 }
 0x66d   :  { %v741_v27 = vpop.permute.xlu1 %740 }
 0x66e   :  { %v739_v29 = vpop.permute.xlu0 %738  ;;  %v747_v33 = vsel %vm251_vm3, %v745_v31, %v741_v27 }
 0x66f   :  { %v746_v32 = vsel %vm251_vm3, %v744_v28, %v739_v29 }
 0x670   :  { %1451 = vmatprep.mubr.msk.f32.mxu1 %vm254_vm4, %v746_v32 }
 0x671   :  { %1452 = vmatmul.mubr.msk.f32.vlgmr.msra.gmra.mxu1 %vm254_vm4, %v747_v33 }
 0x672   :  { %1482 = vmatpush3.msra.mxu1 %v1703_v50 }
 0x673   :  { %1483 = vmatprep.subr.mxu1 %v1708_v51 }
 0x674   :  { %1484 = vmatpush3.msra.mxu1 %v1708_v51 }
 0x675   :  { %1485 = vmatprep.subr.mxu1 %v1716_v52 }
 0x676   :  { %1486 = vmatpush3.msra.mxu1 %v1716_v52 }
 0x677   :  { %1487 = vmatprep.subr.mxu1 %v1725_v53 }
 0x678   :  { %1488 = vmatpush3.msra.mxu1 %v1725_v53 }
 0x679   :  { %1489 = vmatprep.subr.mxu1 %v1734_v54 }
 0x67a   :  { %1490 = vmatpush3.msra.mxu1 %v1734_v54 }
 0x67b   :  { %1491 = vmatprep.subr.mxu1 %v1743_v55 }
 0x67c   :  { %1492 = vmatpush3.msra.mxu1 %v1743_v55 }
 0x67d   :  { %1493 = vmatprep.subr.mxu1 %v1752_v56 }
 0x67e   :  { %1494 = vmatpush3.msra.mxu1 %v1752_v56 }
 0x67f   :  { %1495 = vmatprep.subr.mxu1 %v1761_v57 }
 0x680   :  { %1496 = vmatpush3.msra.mxu1 %v1761_v57 }
 0x681   :  { %1497 = vmatprep.subr.mxu1 %v1776_v59 }
 0x682   :  { %1498 = vmatpush3.msra.mxu1 %v1776_v59 }
 0x683   :  { %1499 = vmatprep.subr.mxu1 %v1784_v60 }
 0x684   :  { %1500 = vmatpush3.msra.mxu1 %v1784_v60 }
 0x685   :  { %1501 = vmatprep.subr.mxu1 %v1791_v61 }
 0x686   :  { %1502 = vmatpush3.msra.mxu1 %v1791_v61 }
 0x687   :  { %1503 = vmatprep.subr.mxu1 %v1810_v1 }
 0x688   :  { %1504 = vmatpush3.msra.mxu1 %v1810_v1 }
 0x731   :  { %v1453_v50 = vpop.f32.mrf.mxu1 }
 0x732   :  { %v826_v51 = vadd.f32 %v1453_v50, %v1871_v26 }
 0x733   :  { %v820_v52 = vpop.f32.mrf.mxu1 }
 0x734   :  { %v830_v53 = vsel %vm715_vm14, %v826_v51, 0.0  ;;  %v821_v54 = vadd.f32 %v1871_v26, %v820_v52 }
 0x735   :  { %v832_v55 = vadd.f32 %v830_v53, %v1953_v38 }
 0x736   :  { %v829_v56 = vsel %vm714_vm15, %v821_v54, 0.0  ;;  %v66_v54 = vld [vmem:[%s2155_s8 + $0x10] sm:$0xff] }
 0x737   :  { %v831_v57 = vadd.f32 %v829_v56, %v1955_v39  ;;  %v834_v59 = vrot.slane %v832_v55, 1  ;;  %v840_v1 = vrot.slane %v832_v55, 2  ;;  %v64_v56 = vld [vmem:[%s2155_s8] sm:$0xff] }
 0x739   :  { %v833_v60 = vrot.slane %v831_v57, 1  ;;  %v839_v61 = vrot.slane %v831_v57, 2 }
 0x73b   :  { %v835_v34 = vsel %vm225_vm1, %v833_v60, %v834_v59  ;;  %v836_v35 = vsel %vm225_vm1, %v834_v59, %v833_v60  ;;  %v842_v38 = vsel %vm230_vm2, %v840_v1, %v839_v61  ;;  %v841_v40 = vsel %vm230_vm2, %v839_v61, %v840_v1 }
 0x73c   :  { %v837_v36 = vmax.f32 %v831_v57, %v835_v34  ;;  %v838_v37 = vmax.f32 %v832_v55, %v836_v35  ;;  %vm959_vm2 = vcmp.lt.s32.totalorder %v1794_v62, 1  ;;  %v65_v55 = vld [vmem:[%s2155_s8 + $0x8] sm:$0xff] }
 0x73e   :  { %v844_v41 = vmax.f32 %v838_v37, %v842_v38  ;;  %v843_v39 = vmax.f32 %v837_v36, %v841_v40  ;;  %v1179_v37 = vld [vmem:[%s2156_s9] ss:$0 sm:$0xff] }
 0x740   :  { %v2067_v42 = vsel %vm580_vm8, %v844_v41, 0.0  ;;  %v2071_v43 = vsel %vm579_vm10, %v843_v39, 0.0 }
 0x741   :  { %v848_v44 = vmax.f32 %v2067_v42, 0.0  ;;  %v847_v45 = vmax.f32 %v2071_v43, 0.0 }
 0x743   :  { %861 = vrot.lane.b32.xlu1 %v848_v44, %s1554_s2  ;;  %859 = vrot.lane.b32.xlu0 %v847_v45, %s1554_s2  ;;  %v853_v46 = vrot.slane %v847_v45, 1  ;;  %v854_v47 = vrot.slane %v848_v44, 1  ;;  %v849_v48 = vrot.slane %v847_v45, 7  ;;  %v850_v49 = vrot.slane %v848_v44, 7 }
 0x745   :  { %v856_v58 = vsel %vm225_vm1, %v854_v47, %v853_v46  ;;  %v855_v63 = vsel %vm225_vm1, %v853_v46, %v854_v47  ;;  %v851_v2 = vsel %vm344_vm7, %v849_v48, %v850_v49  ;;  %v852_v3 = vsel %vm344_vm7, %v850_v49, %v849_v48 }
 0x747   :  { %869 = vrot.lane.b32.xlu1 %v856_v58, %s1553_s4  ;;  %867 = vrot.lane.b32.xlu0 %v855_v63, %s1553_s4 }
 0x7b5   :  { %v862_v4 = vpop.permute.xlu1 %861  ;;  %v860_v5 = vpop.permute.xlu0 %859 }
 0x7b6   :  { %v874_v6 = vsel %vm125_vm0, %v851_v2, %v862_v4  ;;  %v873_v7 = vsel %vm125_vm0, %v852_v3, %v860_v5 }
 0x7b9   :  { %v870_v8 = vpop.permute.xlu1 %869  ;;  %v868_v9 = vpop.permute.xlu0 %867 }
 0x7ba   :  { %v876_v10 = vsel %vm251_vm3, %v874_v6, %v870_v8  ;;  %v875_v11 = vsel %vm251_vm3, %v873_v7, %v868_v9 }
 0x7bb   :  { %1478 = vmatprep.mubr.msk.f32.mxu0 %vm254_vm4, %v875_v11 }
 0x7bc   :  { %1479 = vmatmul.mubr.msk.f32.vlgmr.msra.gmra.mxu0 %vm254_vm4, %v876_v10 }
 0x7bd   :  { %1509 = vmatpush3.msra.mxu0 %v67_v30 }
 0x7be   :  { %1510 = vmatprep.subr.mxu0 %v66_v54 }
 0x7bf   :  { %1511 = vmatpush3.msra.mxu0 %v66_v54 }
 0x7c0   :  { %1512 = vmatprep.subr.mxu0 %v65_v55 }
 0x7c1   :  { %1513 = vmatpush3.msra.mxu0 %v65_v55 }
 0x7c2   :  { %1514 = vmatprep.subr.mxu0 %v64_v56 }
 0x7c3   :  { %1515 = vmatpush3.msra.mxu0 %v64_v56 }
 0x87c   :  { %v1480_v12 = vpop.f32.mrf.mxu0 }
 0x87d   :  { %v955_v13 = vadd.f32 %v1480_v12, %v1871_v26 }
 0x87e   :  { %v949_v14 = vpop.f32.mrf.mxu0 }
 0x87f   :  { %v961_v15 = vsel %vm959_vm2, %v955_v13, 0.0  ;;  %v950_v16 = vadd.f32 %v1871_v26, %v949_v14 }
 0x880   :  { %v963_v17 = vmax.f32 %v961_v15, 0.0 }
 0x881   :  { %v960_v18 = vsel %vm958_vm5, %v950_v16, 0.0 }
 0x882   :  { %v962_v19 = vmax.f32 %v960_v18, 0.0  ;;  %976 = vrot.lane.b32.xlu1 %v963_v17, %s1554_s2  ;;  %v965_v20 = vrot.slane %v963_v17, 7  ;;  %v969_v23 = vrot.slane %v963_v17, 1 }
 0x884   :  { %v964_v21 = vrot.slane %v962_v19, 7  ;;  %974 = vrot.lane.b32.xlu0 %v962_v19, %s1554_s2  ;;  %v968_v22 = vrot.slane %v962_v19, 1 }
 0x886   :  { %v971_v24 = vsel %vm225_vm1, %v969_v23, %v968_v22  ;;  %v970_v25 = vsel %vm225_vm1, %v968_v22, %v969_v23  ;;  %v966_v27 = vsel %vm344_vm7, %v964_v21, %v965_v20  ;;  %v967_v28 = vsel %vm344_vm7, %v965_v20, %v964_v21 }
 0x887   :  { %984 = vrot.lane.b32.xlu1 %v971_v24, %s1553_s4 }
 0x888   :  { %982 = vrot.lane.b32.xlu0 %v970_v25, %s1553_s4 }
 0x8f4   :  { %v977_v29 = vpop.permute.xlu1 %976 }
 0x8f5   :  { %v989_v51 = vsel %vm125_vm0, %v966_v27, %v977_v29 }
 0x8f6   :  { %v975_v31 = vpop.permute.xlu0 %974 }
 0x8f7   :  { %v988_v33 = vsel %vm125_vm0, %v967_v28, %v975_v31 }
 0x8f9   :  { %v985_v32 = vpop.permute.xlu1 %984 }
 0x8fa   :  { %v983_v50 = vpop.permute.xlu0 %982  ;;  %v991_v53 = vsel %vm251_vm3, %v989_v51, %v985_v32 }
 0x8fb   :  { %v990_v52 = vsel %vm251_vm3, %v988_v33, %v983_v50 }
 0x8fc   :  { %1505 = vmatprep.mubr.msk.f32.mxu1 %vm254_vm4, %v990_v52 }
 0x8fd   :  { %1506 = vmatmul.mubr.msk.f32.vlgmr.msra.gmra.mxu1 %vm254_vm4, %v991_v53 }
 0x9bd   :  { %v1507_v57 = vpop.f32.mrf.mxu1 }
 0x9be   :  { %v1070_v59 = vadd.f32 %v1507_v57, %v1871_v26 }
 0x9bf   :  { %v1064_v60 = vpop.f32.mrf.mxu1 }
 0x9c0   :  { %v1065_v61 = vadd.f32 %v1871_v26, %v1064_v60  ;;  %v1074_v1 = vsel %vm959_vm2, %v1070_v59, 0.0 }
 0x9c1   :  { %v1076_v36 = vadd.f32 %v1074_v1, %v2067_v42 }
 0x9c2   :  { %v1073_v34 = vsel %vm958_vm5, %v1065_v61, 0.0 }
 0x9c3   :  { %v1075_v35 = vadd.f32 %v1073_v34, %v2071_v43 }
 0x9c5   :  { %1516 = vmatprep.mubr.msk.f32.mxu0 %vm125_vm0, %v1075_v35 }
 0x9c6   :  { %1517 = vmatmul.mubr.msk.f32.vlgmr.msra.gmra.mxu0 %vm125_vm0, %v1076_v36 }
 0xa86   :  { %v1518_v38 = vpop.f32.mrf.mxu0 }
 0xa87   :  { %v1155_v62 = vadd.f32 %v1518_v38, %v1179_v37 }
 0xa88   :  { %v1149_v26 = vpop.f32.mrf.mxu0 }
 0xa89   :  { %1159 = vst [vmem:[#allocation2 + $0x8] sm:$0xff] %v1155_v62  ;;  %v1150_v0 = vadd.f32 %v1179_v37, %v1149_v26 }
 0xa8b   :  { %1158 = vst [vmem:[#allocation2] sm:$0xff] %v1150_v0 }
 0xa8c   :  { %1541 = shalt.err (!%p1538_p4)
}
 0xa8d   :  { %s1556_s21 = smov 128   ;;  %s1557_s22 = smov 8  }
 0xa8e   :  { %1171 = dma.vmem_to_hbm [thread:$0]  %s1166_s19, 256, %s2157_s10, [#allocation3], %s1556_s21, %s1556_s21, %s1557_s22  }
 0xa8f   :  { %1550 = dma.done.wait [#allocation3], 256  }
 0xa90   :  { %1551 = vsyncadd [#allocation3], 4294967040 }
 0xa91   :  { %1175 = vsyncpa [#allocation3], 1 }

</bundles_post_ra>
